<compile_context>
chip_gen: v5e
topology: v5e:2x2
jax: 0.10.0
libtpu: 0.0.40
codegen_flags: <defaults>
</compile_context>

<pallas_src>
import functools

import jax
import jax.numpy as jnp
from jax.experimental import pallas as pl
from jax.experimental.pallas import tpu as pltpu


_ROWS_CAP = 2048          # max 128-lane rows per tile  (256K lanes)
_LANES_CAP = 256 * 1024   # max lanes per tile on the ragged-H*W path


def _focal_kernel(x_ref, t_ref, out_ref, *, gamma, smooth, num_class,
                  alpha_vals, ro, keep_map, mask_axis, valid_last):
    """One (batch, tile) grid step.

    x_ref:   (1, C, TR, L)  probabilities; class axis leading.
    t_ref:   (1, 1, TR, L)  int32 labels.
    out_ref: (1, 1, RO, L)  row-folded partial sums (or the full (TR, L)
                            per-pixel loss map when keep_map).
    """
    x = x_ref[0].astype(jnp.float32)                        # (C, TR, L)
    t = t_ref[0, 0]                                          # (TR, L)

    # one-hot over the leading class axis (iota is constant per (TR, L) slab)
    cls = jax.lax.broadcasted_iota(jnp.int32, x.shape, 0)
    onehot = (cls == t[None, :, :]).astype(jnp.float32)      # (C, TR, L)

    if smooth:
        lo = smooth / (num_class - 1) if num_class > 1 else 0.0
        hi = 1.0 - smooth
        # clamp(onehot, lo, hi) == lo + onehot*(hi-lo) since onehot in {0,1}
        key = lo + onehot * (hi - lo)
    else:
        key = onehot

    pt = jnp.sum(key * x, axis=0) + smooth                   # (TR, L)
    logpt = jnp.log(pt)

    one_m_pt = 1.0 - pt
    g = float(gamma)
    if g == 0.0:
        focal = jnp.ones_like(pt)
    elif g == int(g) and 1 <= g <= 8:
        focal = one_m_pt
        for _ in range(int(g) - 1):
            focal = focal * one_m_pt
    else:
        focal = jnp.power(one_m_pt, g)        # matches torch.pow (may NaN if pt>1)

    loss = -(focal * logpt)                                   # (TR, L)

    if alpha_vals is not None:
        # alpha[target] == sum_c alpha_c * onehot_c  (reuses the one-hot)
        alpha_t = jnp.float32(alpha_vals[0]) * onehot[0]
        for c in range(1, num_class):
            alpha_t = alpha_t + jnp.float32(alpha_vals[c]) * onehot[c]
        loss = loss * alpha_t

    # Validity mask: only emitted (statically) when the final tile is ragged;
    # the select also blocks NaN/garbage from the padded edge block.
    if mask_axis is not None:
        j = pl.program_id(1)
        full = loss.shape[mask_axis]
        limit = jnp.where(j == pl.num_programs(1) - 1,
                          jnp.int32(valid_last), jnp.int32(full))
        idx = jax.lax.broadcasted_iota(jnp.int32, loss.shape, mask_axis)
        loss = jnp.where(idx < limit, loss, 0.0)

    if keep_map:
        out_ref[0, 0] = loss                   # full per-pixel loss map
    else:
        tr, lanes = loss.shape
        if tr == ro:
            out_ref[0, 0] = loss
        else:
            # fold rows in vreg-aligned groups of 8 sublanes (free reshape + adds)
            out_ref[0, 0] = loss.reshape(tr // ro, ro, lanes).sum(axis=0)


def _vmem_budgets():
    """Generation-aware (tile budget, scoped-VMEM limit) in bytes."""
    cap = None
    try:
        cap = getattr(pltpu.get_tpu_info(), "vmem_capacity_bytes", None)
    except Exception:
        cap = None
    if cap is None:
        cap = 64 << 20                       # conservative (v7x-sized) default
    if cap >= 100 << 20:                     # v5e / v6e: 128 MiB physical VMEM
        return 24 << 20, 48 << 20
    return 14 << 20, 28 << 20                # v7x: 64 MiB physical VMEM


def focal_loss(logit, target, *, alpha=None, gamma=2.0, balance_index=0,
               smooth=1e-5, size_average=True):
    """Forward of FocalLoss (apply_nonlin=None: `logit` are probabilities).

    logit:  (B, C, *spatial) float array.
    target: (B, 1, *spatial) or (B, *spatial) integer class labels.
    Returns the mean loss (size_average=True) or the per-element loss vector.
    """
    if smooth is not None and (smooth < 0 or smooth > 1.0):
        raise ValueError('smooth value should be in [0,1]')

    B = int(logit.shape[0])
    C = int(logit.shape[1])
    HW = 1
    for d in logit.shape[2:]:
        HW *= int(d)
    HW = max(HW, 1)

    # NCHW consumed directly: merging trailing spatial dims is a free reshape.
    x = logit.reshape(B, C, HW)
    t = target.reshape(B, HW)
    if t.dtype != jnp.int32:                 # no-op for int32 inputs
        t = t.astype(jnp.int32)

    # --- static alpha handling (baked into the kernel, no per-step DMA) ---
    if alpha is None:
        alpha_vals = None
    elif isinstance(alpha, (list, tuple)) or hasattr(alpha, '__len__'):
        a = [float(v) for v in alpha]
        assert len(a) == C
        s = sum(a)
        alpha_vals = tuple(v / s for v in a)
    elif isinstance(alpha, float):
        alpha_vals = tuple(float(alpha) if c == balance_index else
                           1.0 - float(alpha) for c in range(C))
    else:
        raise TypeError('Not support alpha type')

    keep_map = not size_average
    budget, vmem_limit = _vmem_budgets()
    x_isz = jnp.dtype(logit.dtype).itemsize

    if HW % 128 == 0:
        # ---- fast path: H*W fills sublanes and lanes: (B, C, R, 128) ----
        R = HW // 128
        # bytes per 128-lane row: double-buffered x & t, plus slack for
        # Mosaic-materialized full-tile f32 temporaries and the output tile.
        per_row = (2 * (C * 128 * x_isz + 128 * 4)
                   + 4 * (C * 128 * 4) + 2 * 128 * 4)
        rows_fit = max(8, int(budget // per_row))
        tr = min(R, _ROWS_CAP, rows_fit)
        if tr < R:
            tr = max(8, (tr // 8) * 8)       # multiple of 8 when tiling rows
        n_tiles = int(pl.cdiv(R, tr))
        rem = R % tr
        mask_axis = 0 if (n_tiles > 1 and rem != 0) else None
        valid_last = rem if rem else tr
        ro = 8 if tr % 8 == 0 else tr
        out_rows = tr if keep_map else ro
        L = 128
        x4 = x.reshape(B, C, R, 128)
        t4 = t.reshape(B, 1, R, 128)
        io_map = lambda b, j: (b, 0, j, 0)
    else:
        # ---- ragged H*W: lane-axis tiling of the flat (B, C, 1, HW) view ----
        per_lane = 2 * (C * x_isz + 4) + 4 * (C * 4) + 2 * 4
        lanes_fit = max(128, int(budget // per_lane))
        tl = min(HW, _LANES_CAP, lanes_fit)
        if tl < HW:
            tl = max(128, (tl // 128) * 128)
        n_tiles = int(pl.cdiv(HW, tl))
        rem = HW % tl
        mask_axis = 1 if (n_tiles > 1 and rem != 0) else None
        valid_last = rem if rem else tl
        tr = 1
        ro = 1
        out_rows = 1
        L = tl
        x4 = x.reshape(B, C, 1, HW)
        t4 = t.reshape(B, 1, 1, HW)
        io_map = lambda b, j: (b, 0, 0, j)

    kernel = functools.partial(
        _focal_kernel,
        gamma=float(gamma),
        smooth=0.0 if smooth is None else float(smooth),
        num_class=C,
        alpha_vals=alpha_vals,
        ro=int(ro),
        keep_map=keep_map,
        mask_axis=mask_axis,
        valid_last=int(valid_last),
    )

    partial = pl.pallas_call(
        kernel,
        out_shape=jax.ShapeDtypeStruct((B, n_tiles, int(out_rows), int(L)),
                                       jnp.float32),
        grid_spec=pltpu.PrefetchScalarGridSpec(
            num_scalar_prefetch=0,
            grid=(B, n_tiles),
            in_specs=[
                pl.BlockSpec((1, C, int(tr), int(L)), io_map),
                pl.BlockSpec((1, 1, int(tr), int(L)), io_map),
            ],
            out_specs=pl.BlockSpec((1, 1, int(out_rows), int(L)),
                                   lambda b, j: (b, j, 0, 0)),
        ),
        compiler_params=pltpu.CompilerParams(
            # all (b, tile) work units are independent -> both axes parallel,
            # keeps v7x's two TensorCores busy even for B = 1.
            dimension_semantics=("parallel", "parallel"),
            vmem_limit_bytes=int(vmem_limit)),
    )(x4, t4)

    if size_average:
        return jnp.sum(partial) / jnp.float32(B * HW)

    # size_average=False: return the per-element loss vector (torch semantics).
    if HW % 128 == 0:
        R = HW // 128
        m = partial.reshape(B, n_tiles * int(tr), 128)[:, :R, :]
        return m.reshape(B * HW)
    m = partial.reshape(B, n_tiles * int(L))[:, :HW]
    return m.reshape(B * HW)


def _focal_loss_ref(logit, target, *, alpha=None, gamma=2.0, balance_index=0,
                    smooth=1e-5, size_average=True):
    """Pure-JAX reference matching the torch module."""
    B, C = logit.shape[0], logit.shape[1]
    x = jnp.transpose(logit.reshape(B, C, -1), (0, 2, 1)).reshape(-1, C)
    x = x.astype(jnp.float32)
    t = target.reshape(-1).astype(jnp.int32)
    if alpha is None:
        alpha_v = jnp.ones((C,), jnp.float32)
    elif isinstance(alpha, (list, tuple)):
        alpha_v = jnp.asarray(alpha, jnp.float32)
        alpha_v = alpha_v / alpha_v.sum()
    else:
        alpha_v = jnp.full((C,), 1.0 - float(alpha), jnp.float32)
        alpha_v = alpha_v.at[balance_index].set(float(alpha))
    onehot = jax.nn.one_hot(t, C, dtype=jnp.float32)
    s = 0.0 if smooth is None else float(smooth)
    if s:
        onehot = jnp.clip(onehot, s / (C - 1), 1.0 - s)
    pt = jnp.sum(onehot * x, axis=1) + s
    logpt = jnp.log(pt)
    loss = -alpha_v[t] * jnp.power(1.0 - pt, gamma) * logpt
    return loss.mean() if size_average else loss


if __name__ == "__main__":
    key = jax.random.PRNGKey(0)
    k1, k2 = jax.random.split(key)

    B, C, H, W = 2, 4, 16, 16
    # probabilities (typical usage feeds softmax-ed logits); apply_nonlin is
    # None in the module so the kernel consumes them as-is.
    raw = jax.random.normal(k1, (B, C, H, W), jnp.float32)
    probs = jax.nn.softmax(raw, axis=1)
    target = jax.random.randint(k2, (B, 1, H, W), 0, C, jnp.int32)

    # mean loss (size_average=True, alpha=None)
    out = focal_loss(probs, target, gamma=2.0, smooth=1e-5, size_average=True)
    out = jax.block_until_ready(out)
    ref = _focal_loss_ref(probs, target, gamma=2.0, smooth=1e-5,
                          size_average=True)
    assert jnp.allclose(out, ref, rtol=1e-5, atol=1e-6), (out, ref)

    # per-element loss (size_average=False)
    out_map = focal_loss(probs, target, gamma=2.0, smooth=1e-5,
                         size_average=False)
    out_map = jax.block_until_ready(out_map)
    ref_map = _focal_loss_ref(probs, target, gamma=2.0, smooth=1e-5,
                              size_average=False)
    assert out_map.shape == ref_map.shape, (out_map.shape, ref_map.shape)
    assert jnp.allclose(out_map, ref_map, rtol=1e-5, atol=1e-6)

    # class-weighted (alpha list) path
    out_a = focal_loss(probs, target, alpha=[0.1, 0.2, 0.3, 0.4], gamma=2.0,
                       smooth=1e-5, size_average=True)
    out_a = jax.block_until_ready(out_a)
    ref_a = _focal_loss_ref(probs, target, alpha=[0.1, 0.2, 0.3, 0.4],
                            gamma=2.0, smooth=1e-5, size_average=True)
    assert jnp.allclose(out_a, ref_a, rtol=1e-5, atol=1e-6), (out_a, ref_a)

    print("KERNEL_OK")
</pallas_src>

<mosaic_0001>
module attributes {stable_mosaic.version = 11 : i64} {
  func.func @_focal_kernel(%arg0: i32, %arg1: i32, %arg2: memref<1x4x2x128xf32, #tpu.memory_space<vmem>>, %arg3: memref<1x1x2x128xi32, #tpu.memory_space<vmem>>, %arg4: memref<1x1x2x128xf32, #tpu.memory_space<vmem>>) attributes {dimension_semantics = [#tpu.dimension_semantics<parallel>, #tpu.dimension_semantics<parallel>], iteration_bounds = array<i64: 2, 1>, scalar_prefetch = 0 : i64, scratch_operands = 0 : i64, tpu.core_type = #tpu.core_type<tc>, window_params = [{transform_indices = @transform_0, window_bounds = array<i64: 1, 4, 2, 128>}, {transform_indices = @transform_1, window_bounds = array<i64: 1, 1, 2, 128>}, {transform_indices = @transform_2, window_bounds = array<i64: 1, 1, 2, 128>}]} {
    %c0 = arith.constant 0 : index
    %c0_0 = arith.constant 0 : index
    %c0_1 = arith.constant 0 : index
    %c0_2 = arith.constant 0 : index
    %0 = vector.load %arg2[%c0, %c0_0, %c0_1, %c0_2] : memref<1x4x2x128xf32, #tpu.memory_space<vmem>>, vector<1x4x2x128xf32>
    %1 = vector.shape_cast %0 : vector<1x4x2x128xf32> to vector<4x2x128xf32>
    %c0_3 = arith.constant 0 : index
    %c0_4 = arith.constant 0 : index
    %c0_5 = arith.constant 0 : index
    %c0_6 = arith.constant 0 : index
    %2 = vector.load %arg3[%c0_3, %c0_4, %c0_5, %c0_6] : memref<1x1x2x128xi32, #tpu.memory_space<vmem>>, vector<1x1x2x128xi32>
    %3 = vector.shape_cast %2 : vector<1x1x2x128xi32> to vector<2x128xi32>
    %4 = tpu.iota {dimensions = array<i32: 0>} : vector<4x2x128xi32>
    %5 = vector.shape_cast %3 : vector<2x128xi32> to vector<1x2x128xi32>
    %6 = vector.broadcast %5 : vector<1x2x128xi32> to vector<4x2x128xi32>
    %7 = arith.cmpi eq, %4, %6 : vector<4x2x128xi32>
    %8 = arith.extui %7 : vector<4x2x128xi1> to vector<4x2x128xi32>
    %9 = arith.sitofp %8 : vector<4x2x128xi32> to vector<4x2x128xf32>
    %cst = arith.constant 0.999986648 : f32
    %10 = vector.broadcast %cst : f32 to vector<4x2x128xf32>
    %11 = arith.mulf %9, %10 : vector<4x2x128xf32>
    %cst_7 = arith.constant 3.33333332E-6 : f32
    %12 = vector.broadcast %cst_7 : f32 to vector<4x2x128xf32>
    %13 = arith.addf %12, %11 : vector<4x2x128xf32>
    %14 = arith.mulf %13, %1 : vector<4x2x128xf32>
    %cst_8 = arith.constant dense<0.000000e+00> : vector<2x128xf32>
    %15 = vector.multi_reduction <add>, %14, %cst_8 [0] : vector<4x2x128xf32> to vector<2x128xf32>
    %cst_9 = arith.constant 9.99999974E-6 : f32
    %16 = vector.broadcast %cst_9 : f32 to vector<2x128xf32>
    %17 = arith.addf %15, %16 : vector<2x128xf32>
    %18 = math.log %17 : vector<2x128xf32>
    %cst_10 = arith.constant 1.000000e+00 : f32
    %19 = vector.broadcast %cst_10 : f32 to vector<2x128xf32>
    %20 = arith.subf %19, %17 : vector<2x128xf32>
    %21 = arith.mulf %20, %20 : vector<2x128xf32>
    %22 = arith.mulf %21, %18 : vector<2x128xf32>
    %cst_11 = arith.constant 0.000000e+00 : f32
    %23 = vector.broadcast %cst_11 : f32 to vector<2x128xf32>
    %24 = arith.subf %23, %22 : vector<2x128xf32>
    %c0_12 = arith.constant 0 : index
    %c0_13 = arith.constant 0 : index
    %c0_14 = arith.constant 0 : index
    %c0_15 = arith.constant 0 : index
    %25 = vector.load %arg4[%c0_12, %c0_13, %c0_14, %c0_15] : memref<1x1x2x128xf32, #tpu.memory_space<vmem>>, vector<1x1x2x128xf32>
    %26 = vector.shape_cast %25 : vector<1x1x2x128xf32> to vector<2x128xf32>
    %27 = vector.shape_cast %24 : vector<2x128xf32> to vector<1x1x2x128xf32>
    tpu.vector_store %arg4[%c0_12, %c0_13, %c0_14, %c0_15], %27 {strides = array<i32>} : memref<1x1x2x128xf32, #tpu.memory_space<vmem>>, vector<1x1x2x128xf32>,
    return
  }
  func.func @transform_0(%arg0: i32, %arg1: i32) -> (i32, i32, i32, i32) {
    %c0_i32 = arith.constant 0 : i32
    %c0_i32_0 = arith.constant 0 : i32
    %c0_i32_1 = arith.constant 0 : i32
    return %arg0, %c0_i32, %arg1, %c0_i32_0 : i32, i32, i32, i32
  }
  func.func @transform_1(%arg0: i32, %arg1: i32) -> (i32, i32, i32, i32) {
    %c0_i32 = arith.constant 0 : i32
    %c0_i32_0 = arith.constant 0 : i32
    %c0_i32_1 = arith.constant 0 : i32
    return %arg0, %c0_i32, %arg1, %c0_i32_0 : i32, i32, i32, i32
  }
  func.func @transform_2(%arg0: i32, %arg1: i32) -> (i32, i32, i32, i32) {
    %c0_i32 = arith.constant 0 : i32
    %c0_i32_0 = arith.constant 0 : i32
    %c0_i32_1 = arith.constant 0 : i32
    return %arg0, %arg1, %c0_i32, %c0_i32_0 : i32, i32, i32, i32
  }
}

</mosaic_0001>

<bundles_post_ra>
// kernel: tpu_custom_call.1
= control target key start
LH: loop header
LB: loop body
LE: loop exit
PB: predicated region body
PF: predicated region fallthrough
CT: control target
= control target key end

     0   :  { %7 = vsyncpa [#allocation3], 0  ;;  %s792_s0 = inlined_call_operand.hbm [shape: f32[2,4,2,128], index: 0, kind: input, shape index: {}]   ;;  %s793_s1 = inlined_call_operand.hbm [shape: s32[2,1,2,128], index: 1, kind: input, shape index: {}]   ;;  %s794_s2 = inlined_call_operand.hbm [shape: f32[2,1,2,128], index: 2, kind: output, shape index: {}]  }
   0x1   :  { %9 = vsyncpa [#allocation3 + $0x1], 0 }
   0x2   :  { %10 = vsyncpa [#allocation6], 0 }
   0x3   :  { %12 = vsyncpa [#allocation6 + $0x1], 0 }
   0x4   :  { %13 = vsyncpa [#allocation4], 0 }
   0x5   :  { %15 = vsyncpa [#allocation4 + $0x1], 0  ;;  %s650_s9 = smov 0   ;;  %s652_s10 = smov 0  }
   0x6   :  { %s654_s11 = smov 0   ;;  %s656_s12 = smov 0  }
   0x7   :  { %s658_s13 = smov 0   ;;  %s660_s14 = smov 0  }
   0x8 LB: > { %s390_s15 = sadd.s32 4294967295, %s630_s14   ;;  %s391_s16 = sadd.s32 4294967294, %s630_s14   ;;  %s630_s14 = sphi %s660_s14, %s21_s14   ;;  %s626_s13 = sphi %s658_s13, %s804_s13   ;;  %s622_s12 = sphi %s656_s12, %s803_s12   ;;  %s618_s11 = sphi %s654_s11, %s802_s11   ;;  %s614_s10 = sphi %s652_s10, %s801_s10   ;;  %s610_s9 = sphi %s650_s9, %s800_s9  }
   0x9   : > { %s33_s17 = sadd.s32 1, %s626_s13  ;;  %s42_s18 = sadd.s32 1, %s618_s11 }
   0xa   : > { %p35_p0 = scmp.ge.s32.totalorder %s33_s17, 2  ;;  %p49_p1 = scmp.ne.s32.totalorder %s618_s11, %s614_s10 }
   0xb   : > { %p50_p2 = scmp.eq.s32.totalorder %s630_s14, 0  ;;  %p55_p3 = scmp.ne.s32.totalorder %s614_s10, %s610_s9 }
   0xc   : > { %s806_s17 = smov (%p35_p0, %s33_s17), 0  ;;  %p56_p5 = scmp.eq.s32.totalorder %s390_s15, 0 }
   0xd   : > { %p691_p4 = por %p50_p2, %p49_p1  ;;  %s37_s20 = ssub.s32 %s626_s13, %s806_s17 }
   0xe   : > { %p109_p6 = scmp.eq.s32.totalorder %s390_s15, 1  ;;  %p40_p7 = scmp.eq.s32.totalorder %s37_s20, 0 }
   0xf   : > { %p697_p8 = por %p56_p5, %p55_p3  ;;  %p115_p10 = scmp.eq.s32.totalorder %s391_s16, 1 }
  0x10   : > { %p701_p9 = por %p109_p6, %p49_p1  ;;  %p393_p12 = scmp.ge.s32.totalorder %s630_s14, 2 }
  0x11   : > { %s706_s23 = scalar_select %p40_p7, %s618_s11, %s42_s18  }
  0x12   : > { %p708_p11 = por %p115_p10, %p55_p3  ;;  %p429_p13 = scmp.lt.s32.totalorder %s630_s14, 2 }
  0x13   : > { %s135_s25 = sand.u32 1, %s618_s11   ;;  %s411_s27 = sshll.u32 %s626_s13, 3 }
  0x14   : > { %s394_s26 = sshll.u32 %s135_s25, 3  ;;  %s145_s30 = scalar_lea.hbm %s792_s0, %s411_s27 }
  0x15   : > { %s139_s3 = scalar_lea.vmem [#allocation2], %s394_s26  ;;  %s146_s5 = sshll.u32 %s145_s30, 4  ;;  %s147_s5 = int_to_ptr.hbm [resolvable:$true] %s146_s5 }
  0x16   : > { %s148_s4 = sshll.u32 %s139_s3, 4  ;;  %p721_p0 = pnand %p429_p13, %p691_p4  ;;  %s149_s4 = int_to_ptr.vmem [resolvable:$true] %s148_s4 }
  0x17   : > { %p399_p1 = scmp.ge.s32.totalorder %s630_s14, 1  ;;  %s136_s7 = scalar_lea.sflag [#allocation3], %s135_s25 }
  0x18   : > { %s632_s8 = smov 32   ;;  %s633_s15 = smov 2  }
  0x19   : > { %421 = dma.hbm_to_vmem [thread:$0]  (!%p721_p0), %s147_s5, 128, %s149_s4, %s136_s7, %s632_s8, %s632_s8, %s633_s15  }
  0x1a   : > { %p176_p2 = scmp.lt.s32.totalorder %s630_s14, 3  ;;  %s397_s16 = sshll.u32 %s135_s25, 1 }
  0x1b   : > { %s398_s18 = sshll.u32 %s626_s13, 1  ;;  %s162_s27 = scalar_lea.vmem [#allocation5], %s397_s16 }
  0x1c   : > { %p177_p3 = pnand %p399_p1, %p176_p2  ;;  %s167_s19 = scalar_lea.hbm %s793_s1, %s398_s18 }
  0x1d   : > { %s171_s28 = sshll.u32 %s162_s27, 4  ;;  %s169_s29 = sshll.u32 %s167_s19, 4  ;;  %s172_s28 = int_to_ptr.vmem [resolvable:$true] %s171_s28  ;;  %s170_s29 = int_to_ptr.hbm [resolvable:$true] %s169_s29 }
  0x1e   : > { %s159_s30 = scalar_lea.sflag [#allocation6], %s135_s25  ;;  %180 = sbr.rel (%p177_p3) target bundleno = 73 (0x49), region = 28 }
  0x1f   : > { %424 = dma.hbm_to_vmem [thread:$0]  (!%p721_p0), %s170_s29, 32, %s172_s28, %s159_s30  }
  0x20   : > { %s736_s3 = sand.u32 (!%p177_p3), 1, %s614_s10  }
  0x21   : > { %s400_s4 = sshll.u32 (!%p177_p3), %s736_s3, 3  ;;  %s183_s5 = scalar_lea.sflag (!%p177_p3), [#allocation3], %s736_s3 }
  0x22   : > { %s186_s7 = scalar_lea.vmem (!%p177_p3), [#allocation2], %s400_s4 }
  0x23   : > { %597 = dma.done.wait (%p697_p8), %s183_s5, 128  }
  0x24   : > { %599 = vsyncadd (%p697_p8), %s183_s5, 4294967168  ;;  %s401_s25 = sshll.u32 %s736_s3, 1  ;;  %s193_s6 = scalar_lea.sflag [#allocation6], %s736_s3 }
  0x25   : > { %s196_s8 = scalar_lea.vmem [#allocation5], %s401_s25 }
  0x26   : > { %601 = dma.done.wait (%p697_p8), %s193_s6, 32  }
  0x27   : > { %603 = vsyncadd (%p697_p8), %s193_s6, 4294967264  ;;  %v227_v0 = vld [vmem:[%s196_s8] sm:$0x3]  ;;  %v223_v1 = vld [vmem:[%s186_s7] sm:$0x3]  ;;  %v634_v3 = vmov 0.0  }
  0x28   : > { %vm228_vm0 = vcmp.eq.s32.totalorder %v227_v0, 0  ;;  %vm229_vm1 = vcmp.eq.s32.totalorder %v227_v0, 1  ;;  %vm230_vm2 = vcmp.eq.s32.totalorder %v227_v0, 2  ;;  %vm231_vm3 = vcmp.eq.s32.totalorder %v227_v0, 3  ;;  %v224_v2 = vld [vmem:[%s186_s7 + $0x2] sm:$0x3] }
  0x29   : > { %v403_v4 = vsel %vm228_vm0, 1.0, %v634_v3  ;;  %v404_v5 = vsel %vm229_vm1, 1.0, %v634_v3  ;;  %v405_v6 = vsel %vm230_vm2, 1.0, %v634_v3  ;;  %v406_v7 = vsel %vm231_vm3, 1.0, %v634_v3  ;;  %v225_v11 = vld [vmem:[%s186_s7 + $0x4] sm:$0x3] }
  0x2a   : > { %v240_v8 = vmul.f32 0.99998665, %v403_v4  ;;  %v241_v9 = vmul.f32 0.99998665, %v404_v5  ;;  %v242_v10 = vmul.f32 0.99998665, %v405_v6 }
  0x2b   : > { %v226_v12 = vld [vmem:[%s186_s7 + $0x6] sm:$0x3]  ;;  %v243_v13 = vmul.f32 0.99998665, %v406_v7  ;;  %vm252_vm4 = vcmask 1041408   ;;  %s408_s21 = sshll.u32 %s622_s12, 1 }
  0x2c   : > { %v244_v14 = vadd.f32 3.3333333e-06, %v240_v8  ;;  %v245_v15 = vadd.f32 3.3333333e-06, %v241_v9  ;;  %v246_v16 = vadd.f32 3.3333333e-06, %v242_v10  ;;  %s280_s18 = scalar_lea.hbm %s794_s2, %s408_s21 }
  0x2d   : > { %v247_v17 = vadd.f32 3.3333333e-06, %v243_v13  ;;  %s222_s20 = scalar_lea.vmem [#allocation7], %s401_s25  ;;  %s284_s19 = sshll.u32 %s280_s18, 4  ;;  %s285_s19 = int_to_ptr.hbm [resolvable:$true] %s284_s19 }
  0x2e   : > { %v248_v18 = vmul.f32 %v244_v14, %v223_v1  ;;  %v249_v19 = vmul.f32 %v245_v15, %v224_v2  ;;  %v250_v20 = vmul.f32 %v246_v16, %v225_v11  ;;  %s282_s26 = sshll.u32 %s222_s20, 4  ;;  %s269_s27 = scalar_lea.sflag [#allocation4], %s736_s3  ;;  %s283_s26 = int_to_ptr.vmem [resolvable:$true] %s282_s26 }
  0x2f   : > { %v251_v21 = vmul.f32 %v247_v17, %v226_v12  ;;  %s558_s28 = sshra.s32 %s285_s19, 4  ;;  %s564_s4 = scalar_lea.hbm %s794_s2, 4  ;;  %s559_s28 = int_to_ptr.hbm [resolvable:$true] %s558_s28 }
  0x30   : > { %v253_v22 = vsel %vm252_vm4, %v248_v18, 0.0  ;;  %v254_v23 = vsel %vm252_vm4, %v249_v19, 0.0  ;;  %v256_v24 = vsel %vm252_vm4, %v250_v20, 0.0  ;;  %s560_s12 = scalar_lea.hbm %s559_s28, 2  ;;  %p565_p7 = scmp.lt.s32.totalorder %s559_s28, %s794_s2 }
  0x31   : > { %v255_v25 = vadd.f32 %v254_v23, %v253_v22  ;;  %v258_v26 = vsel %vm252_vm4, %v251_v21, 0.0  ;;  %p561_p4 = scmp.ne.s32.totalorder %s559_s28, %s560_s12  ;;  %p566_p8 = scmp.lt.s32.totalorder %s564_s4, %s560_s12 }
  0x33   : > { %v257_v27 = vadd.f32 %v256_v24, %v255_v25  ;;  %p562_p5 = pnand %p561_p4, %p701_p9  ;;  %p567_p10 = por %p566_p8, %p565_p7 }
  0x35   : > { %v259_v28 = vadd.f32 %v258_v26, %v257_v27  ;;  %p563_p6 = pneg %p562_p5 }
  0x37   : > { %v260_v29 = vadd.f32 1e-05, %v259_v28  ;;  %p568_p13 = pnand %p567_p10, %p563_p6 }
  0x39   : > { %482 = vlog2.f32 %v260_v29  ;;  %v263_v30 = vsub.f32 1.0, %v260_v29 }
  0x3b   : > { %v264_v31 = vmul.f32 %v263_v30, %v263_v30 }
  0x3f   : > { %v483_v32 = vpop.eup %482 }
  0x40   : > { %v262_v33 = vmul.f32 0.6931472, %v483_v32 }
  0x42   : > { %v265_v34 = vmul.f32 %v264_v31, %v262_v33 }
  0x44   : > { %v266_v35 = vsub.f32 0.0, %v265_v34 }
  0x46   : > { %267 = vst [vmem:[%s222_s20] sm:$0x3] %v266_v35 }
  0x47   : > { %571 = shalt.err (!%p568_p13)
}
  0x48   : > { %416 = dma.vmem_to_hbm [thread:$0]  (%p701_p9), %s283_s26, 32, %s285_s19, %s269_s27  }
  0x49 PF: > { %s296_s3 = sand.u32 1, %s610_s9   ;;  %p426_p0 = pnand %p393_p12, %p708_p11 }
  0x4a   : > { %s297_s25 = scalar_lea.sflag [#allocation4], %s296_s3 }
  0x4b   : > { %p427_p1 = pneg %p426_p0 }
  0x4d   : > { %605 = dma.done.wait (%p427_p1), %s297_s25, 32  }
  0x4e   : > { %607 = vsyncadd (%p427_p1), %s297_s25, 4294967264  ;;  %s21_s14 = sadd.s32 1, %s630_s14   ;;  %s800_s9 = smov %s614_s10 }
  0x4f   : > { %p18_p2 = scmp.ge.s32.totalorder %s21_s14, 4   ;;  %s801_s10 = smov %s618_s11 }
  0x50   : > { %s802_s11 = smov %s706_s23  ;;  %s803_s12 = smov %s626_s13 }
  0x51   : > { %s804_s13 = smov %s806_s17  ;;  %20 = sbr.rel (!%p18_p2) target bundleno = 8 (0x8), region = 86 }
  0x56   :  { %303 = vsyncpa [#allocation3], 1 }
  0x57   :  { %305 = vsyncpa [#allocation3 + $0x1], 1 }
  0x58   :  { %306 = vsyncpa [#allocation6], 1 }
  0x59   :  { %308 = vsyncpa [#allocation6 + $0x1], 1 }
  0x5a   :  { %309 = vsyncpa [#allocation4], 1 }
  0x5b   :  { %311 = vsyncpa [#allocation4 + $0x1], 1 }

</bundles_post_ra>
